<compile_context>
chip_gen: v7x
topology: tpu7x:2x2x1
jax: 0.10.0
libtpu: 0.0.40
codegen_flags: <defaults>
</compile_context>

<pallas_src>
import functools
import math

import jax
import jax.numpy as jnp
from jax import lax
from jax.experimental import pallas as pl
from jax.experimental.pallas import tpu as pltpu


def _patch_merge_kernel(x_ref, w_ref, aux_ref, o_ref, *, eps, precision):
    # x_ref:   (th, 2, Wo, 2C)  dim 1 = H parity; channels packed [W-even C | W-odd C]
    # w_ref:   (4C, 2C)         gamma-folded reduction weight, rows [x0|x2|x1|x3]
    # aux_ref: (2, 2C) fp32     row 0 = colsum(W_fold), row 1 = beta @ W_red^T
    # o_ref:   (th*Wo, 2C)
    th, _, wo, c2 = x_ref.shape
    tm = th * wo

    xe = x_ref[:, 0].reshape(tm, c2)   # rows 2*ho   -> channels [x0 | x2]
    xo = x_ref[:, 1].reshape(tm, c2)   # rows 2*ho+1 -> channels [x1 | x3]

    # LayerNorm statistics over all 4C channels (permutation invariant),
    # single pass in fp32 (biased variance, like nn.LayerNorm).
    xe32 = xe.astype(jnp.float32)
    xo32 = xo.astype(jnp.float32)
    inv_c4 = 1.0 / (2 * c2)
    ssum = (jnp.sum(xe32, axis=-1, keepdims=True)
            + jnp.sum(xo32, axis=-1, keepdims=True))
    ssq = (jnp.sum(xe32 * xe32, axis=-1, keepdims=True)
           + jnp.sum(xo32 * xo32, axis=-1, keepdims=True))
    mean = ssum * inv_c4
    var = jnp.maximum(ssq * inv_c4 - mean * mean, 0.0)
    s = lax.rsqrt(var + eps)

    # Two accumulating MXU matmuls on the raw activations (no concat, no
    # normalize pass over (tm, 4C)); normalization applied post-matmul.
    w = w_ref[...]
    acc = jnp.dot(xe.astype(w.dtype), w[:c2, :],
                  preferred_element_type=jnp.float32, precision=precision)
    acc = acc + jnp.dot(xo.astype(w.dtype), w[c2:, :],
                        preferred_element_type=jnp.float32, precision=precision)

    colsum = aux_ref[0:1, :]   # (1, 2C) fp32
    b_proj = aux_ref[1:2, :]   # (1, 2C) fp32
    out = s * acc - (s * mean) * colsum + b_proj
    o_ref[...] = out.astype(o_ref.dtype)


def _rows_per_tile(n_rows, wo, c, x_bytes, w_bytes, tile_tokens, vmem_budget_bytes):
    """Pick how many (b, ho) rows (each = Wo tokens) one grid step handles."""
    c4, c2 = 4 * c, 2 * c
    in_row = wo * c4 * x_bytes                 # one fused even+odd operand (contiguous)
    out_row = wo * c2 * x_bytes
    tmp_row = wo * (c4 * 4 + 2 * c2 * 4)       # fp32 stat casts + acc/fixup temps
    per_row = 2 * in_row + 2 * out_row + tmp_row   # x2: double-buffered in/out
    const_bytes = 2 * (c4 * c2 * w_bytes + 2 * c2 * 4)  # weight (2 bufs) + aux
    avail = max(vmem_budget_bytes - const_bytes, per_row)

    th = max(1, min(avail // per_row, max(1, tile_tokens // max(wo, 1))))
    # Keep >= ~4 grid steps when possible (pipeline overlap + megacore sharding).
    th = min(th, max(1, -(-n_rows // 4)))
    # Align the flattened token tile (th*Wo) to the sublane packing of the
    # in/out dtype so the output store tile obeys the (8,128) rule and the
    # in-kernel (th, Wo, 2C) -> (th*Wo, 2C) flatten stays layout-preserving.
    sub = max(8, 32 // x_bytes)                # 8 for f32, 16 for bf16
    unit = sub // math.gcd(wo, sub)
    th = int(-(-th // unit) * unit)

    # Prefer an even number of grid steps (v7x splits the parallel axis over 2 TCs).
    def _steps(t):
        return -(-n_rows // t)

    if _steps(th) > 1 and _steps(th) % 2 == 1:
        t = th
        while t > unit and _steps(t) % 2 == 1:
            t -= unit
        if _steps(t) % 2 == 0:
            th = t
    return th


def patch_merging_2d(x, ln_weight, ln_bias, red_weight, *, eps=1e-5,
                     matmul_dtype=None, tile_tokens=8192,
                     vmem_budget_bytes=28 * 1024 * 1024,
                     vmem_limit_bytes=48 * 1024 * 1024):
    """PatchMerging2D forward.  x: (B, H, W, C) -> (B, H//2, W//2, 2*C)."""
    B, H, W, C = x.shape
    Ho, Wo = H // 2, W // 2
    if (H % 2) or (W % 2):
        # Matches PyTorch's SHAPE_FIX path: trailing odd row/col is dropped.
        x = x[:, : 2 * Ho, : 2 * Wo, :]

    c4, c2 = 4 * C, 2 * C
    n_rows = B * Ho
    n_tok = n_rows * Wo

    if matmul_dtype is None:
        # bf16 MXU matmul when the activations are bf16; keep fp32 otherwise.
        matmul_dtype = jnp.bfloat16 if x.dtype == jnp.bfloat16 else jnp.float32
    matmul_dtype = jnp.dtype(matmul_dtype)
    precision = (lax.Precision.HIGHEST if matmul_dtype == jnp.float32
                 else lax.Precision.DEFAULT)

    # Free reshape: (B, 2Ho, 2Wo, C) -> (B*Ho, 2, Wo, 2C).
    # dim 1 is the H parity; last dim packs [W-even C | W-odd C] back-to-back,
    # i.e. parity 0 -> [x0|x2], parity 1 -> [x1|x3].
    x5 = x.reshape(n_rows, 2, Wo, c2)

    # Host-side one-time folds:
    #  * gamma folded into the reduction weight, rows permuted from the
    #    module's [x0|x1|x2|x3] order to the fused [x0|x2|x1|x3] order,
    #  * colsum(W_fold) for the post-matmul mean correction,
    #  * beta projected through the reduction weight.
    w_t = red_weight.astype(jnp.float32).T                      # (4C, 2C)
    w_fold32 = ln_weight.astype(jnp.float32)[:, None] * w_t
    w4 = w_fold32.reshape(4, C, c2)
    w_fold = jnp.concatenate([w4[0], w4[2], w4[1], w4[3]], axis=0).astype(matmul_dtype)
    colsum = jnp.sum(w_fold.astype(jnp.float32), axis=0, keepdims=True)   # (1, 2C)
    b_proj = jnp.sum(ln_bias.astype(jnp.float32)[:, None] * w_t,
                     axis=0, keepdims=True)                                # (1, 2C)
    aux = jnp.concatenate([colsum, b_proj], axis=0)                        # (2, 2C) fp32

    x_bytes = jnp.dtype(x.dtype).itemsize
    th = _rows_per_tile(n_rows, Wo, C, x_bytes, matmul_dtype.itemsize,
                        tile_tokens, vmem_budget_bytes)
    tm = th * Wo
    grid = (pl.cdiv(n_rows, th),)

    kernel = functools.partial(_patch_merge_kernel, eps=eps, precision=precision)

    out = pl.pallas_call(
        kernel,
        out_shape=jax.ShapeDtypeStruct((n_tok, c2), x.dtype),
        grid_spec=pltpu.PrefetchScalarGridSpec(
            num_scalar_prefetch=0,
            grid=grid,
            in_specs=[
                # One contiguous DMA per step: th full (b, ho) rows, both parities.
                pl.BlockSpec((th, 2, Wo, c2), lambda i: (i, 0, 0, 0)),
                # Constant-index operands: DMA'd once, reused across the grid.
                pl.BlockSpec((c4, c2), lambda i: (0, 0)),
                pl.BlockSpec((2, c2), lambda i: (0, 0)),
            ],
            out_specs=pl.BlockSpec((tm, c2), lambda i: (i, 0)),
        ),
        compiler_params=pltpu.CompilerParams(
            dimension_semantics=("parallel",),
            # Tiles were sized against ~28 MiB; 48 MiB leaves headroom and is
            # valid on v5e/v6e (128 MiB phys) and v7x (64 MiB phys).
            vmem_limit_bytes=vmem_limit_bytes,
        ),
    )(x5, w_fold, aux)

    return out.reshape(B, Ho, Wo, c2)


def _reference(x, ln_weight, ln_bias, red_weight, eps=1e-5):
    B, H, W, C = x.shape
    Ho, Wo = H // 2, W // 2
    x0 = x[:, 0::2, 0::2, :][:, :Ho, :Wo, :]
    x1 = x[:, 1::2, 0::2, :][:, :Ho, :Wo, :]
    x2 = x[:, 0::2, 1::2, :][:, :Ho, :Wo, :]
    x3 = x[:, 1::2, 1::2, :][:, :Ho, :Wo, :]
    xc = jnp.concatenate([x0, x1, x2, x3], axis=-1).astype(jnp.float32)
    mean = xc.mean(-1, keepdims=True)
    var = ((xc - mean) ** 2).mean(-1, keepdims=True)
    normed = ((xc - mean) / jnp.sqrt(var + eps) * ln_weight.astype(jnp.float32)
              + ln_bias.astype(jnp.float32))
    return jnp.einsum("bhwk,ok->bhwo", normed, red_weight.astype(jnp.float32))


if __name__ == "__main__":
    key = jax.random.PRNGKey(0)
    keys = jax.random.split(key, 8)

    # ---- 1) small fp32 check (module-exact semantics, fp32 matmul path) ----
    B, H, W, C = 2, 16, 16, 4
    x = jax.random.normal(keys[0], (B, H, W, C), dtype=jnp.float32)
    ln_w = 1.0 + 0.1 * jax.random.normal(keys[1], (4 * C,), dtype=jnp.float32)
    ln_b = 0.1 * jax.random.normal(keys[2], (4 * C,), dtype=jnp.float32)
    bound = 1.0 / (4.0 * C) ** 0.5
    red_w = jax.random.uniform(keys[3], (2 * C, 4 * C), dtype=jnp.float32,
                               minval=-bound, maxval=bound)
    out = jax.block_until_ready(patch_merging_2d(x, ln_w, ln_b, red_w))
    ref = _reference(x, ln_w, ln_b, red_w)
    assert out.shape == (B, H // 2, W // 2, 2 * C), out.shape
    err = float(jnp.max(jnp.abs(out - ref)))
    assert err < 2e-3, err

    # ---- 2) odd-shape + ragged-grid fp32 check (SHAPE_FIX crop path) ----
    Br, Hr, Wr, Cr = 1, 11, 13, 4
    xr = jax.random.normal(keys[4], (Br, Hr, Wr, Cr), dtype=jnp.float32)
    ln_wr = 1.0 + 0.1 * jax.random.normal(keys[5], (4 * Cr,), dtype=jnp.float32)
    ln_br = 0.1 * jax.random.normal(keys[6], (4 * Cr,), dtype=jnp.float32)
    boundr = 1.0 / (4.0 * Cr) ** 0.5
    red_wr = jax.random.uniform(keys[7], (2 * Cr, 4 * Cr), dtype=jnp.float32,
                                minval=-boundr, maxval=boundr)
    outr = jax.block_until_ready(patch_merging_2d(xr, ln_wr, ln_br, red_wr))
    refr = _reference(xr, ln_wr, ln_br, red_wr)
    assert outr.shape == (Br, Hr // 2, Wr // 2, 2 * Cr), outr.shape
    errr = float(jnp.max(jnp.abs(outr - refr)))
    assert errr < 2e-3, errr

    # ---- 3) bf16 / lane-dense check (bf16 MXU path, 4C=256, 2C=128) ----
    Bb, Hb, Wb, Cb = 2, 32, 32, 64
    xb = jax.random.normal(keys[0], (Bb, Hb, Wb, Cb),
                           dtype=jnp.float32).astype(jnp.bfloat16)
    ln_wb = 1.0 + 0.1 * jax.random.normal(keys[1], (4 * Cb,), dtype=jnp.float32)
    ln_bb = 0.1 * jax.random.normal(keys[2], (4 * Cb,), dtype=jnp.float32)
    boundb = 1.0 / (4.0 * Cb) ** 0.5
    red_wb = jax.random.uniform(keys[3], (2 * Cb, 4 * Cb), dtype=jnp.float32,
                                minval=-boundb, maxval=boundb)
    outb = jax.block_until_ready(patch_merging_2d(xb, ln_wb, ln_bb, red_wb))
    refb = _reference(xb, ln_wb, ln_bb, red_wb)
    assert outb.shape == (Bb, Hb // 2, Wb // 2, 2 * Cb), outb.shape
    errb = float(jnp.max(jnp.abs(outb.astype(jnp.float32) - refb)))
    # Loose tolerance: output, weight and matmul operands are bf16 on this path.
    assert errb < 1.5e-1, errb

    print("KERNEL_OK")
</pallas_src>

<mosaic_0001>
module attributes {stable_mosaic.version = 11 : i64} {
  func.func @_patch_merge_kernel(%arg0: i32, %arg1: memref<4x2x8x8xf32, #tpu.memory_space<vmem>>, %arg2: memref<16x8xf32, #tpu.memory_space<vmem>>, %arg3: memref<2x8xf32, #tpu.memory_space<vmem>>, %arg4: memref<32x8xf32, #tpu.memory_space<vmem>>) attributes {dimension_semantics = [#tpu.dimension_semantics<parallel>], iteration_bounds = array<i64: 4>, scalar_prefetch = 0 : i64, scratch_operands = 0 : i64, tpu.core_type = #tpu.core_type<tc>, window_params = [{transform_indices = @transform_0, window_bounds = array<i64: 4, 2, 8, 8>}, {pipeline_mode = #tpu.pipeline_mode<synchronous>, transform_indices = @transform_1, window_bounds = array<i64: 16, 8>}, {pipeline_mode = #tpu.pipeline_mode<synchronous>, transform_indices = @transform_2, window_bounds = array<i64: 2, 8>}, {transform_indices = @transform_3, window_bounds = array<i64: 32, 8>}]} {
    %c0 = arith.constant 0 : index
    %c0_0 = arith.constant 0 : index
    %c0_1 = arith.constant 0 : index
    %c0_2 = arith.constant 0 : index
    %0 = vector.load %arg1[%c0, %c0_0, %c0_1, %c0_2] : memref<4x2x8x8xf32, #tpu.memory_space<vmem>>, vector<4x1x8x8xf32>
    %1 = vector.shape_cast %0 : vector<4x1x8x8xf32> to vector<4x8x8xf32>
    %2 = vector.shape_cast %1 : vector<4x8x8xf32> to vector<32x8xf32>
    %c0_3 = arith.constant 0 : index
    %c1 = arith.constant 1 : index
    %c0_4 = arith.constant 0 : index
    %c0_5 = arith.constant 0 : index
    %3 = vector.load %arg1[%c0_3, %c1, %c0_4, %c0_5] : memref<4x2x8x8xf32, #tpu.memory_space<vmem>>, vector<4x1x8x8xf32>
    %4 = vector.shape_cast %3 : vector<4x1x8x8xf32> to vector<4x8x8xf32>
    %5 = vector.shape_cast %4 : vector<4x8x8xf32> to vector<32x8xf32>
    %cst = arith.constant dense<0.000000e+00> : vector<32xf32>
    %6 = vector.multi_reduction <add>, %2, %cst [1] : vector<32x8xf32> to vector<32xf32>
    %7 = vector.shape_cast %6 : vector<32xf32> to vector<32x1xf32>
    %cst_6 = arith.constant dense<0.000000e+00> : vector<32xf32>
    %8 = vector.multi_reduction <add>, %5, %cst_6 [1] : vector<32x8xf32> to vector<32xf32>
    %9 = vector.shape_cast %8 : vector<32xf32> to vector<32x1xf32>
    %10 = arith.addf %7, %9 : vector<32x1xf32>
    %11 = arith.mulf %2, %2 : vector<32x8xf32>
    %cst_7 = arith.constant dense<0.000000e+00> : vector<32xf32>
    %12 = vector.multi_reduction <add>, %11, %cst_7 [1] : vector<32x8xf32> to vector<32xf32>
    %13 = vector.shape_cast %12 : vector<32xf32> to vector<32x1xf32>
    %14 = arith.mulf %5, %5 : vector<32x8xf32>
    %cst_8 = arith.constant dense<0.000000e+00> : vector<32xf32>
    %15 = vector.multi_reduction <add>, %14, %cst_8 [1] : vector<32x8xf32> to vector<32xf32>
    %16 = vector.shape_cast %15 : vector<32xf32> to vector<32x1xf32>
    %17 = arith.addf %13, %16 : vector<32x1xf32>
    %cst_9 = arith.constant 6.250000e-02 : f32
    %18 = vector.broadcast %cst_9 : f32 to vector<32x1xf32>
    %19 = arith.mulf %10, %18 : vector<32x1xf32>
    %cst_10 = arith.constant 6.250000e-02 : f32
    %20 = vector.broadcast %cst_10 : f32 to vector<32x1xf32>
    %21 = arith.mulf %17, %20 : vector<32x1xf32>
    %22 = arith.mulf %19, %19 : vector<32x1xf32>
    %23 = arith.subf %21, %22 : vector<32x1xf32>
    %cst_11 = arith.constant 0.000000e+00 : f32
    %24 = vector.broadcast %cst_11 : f32 to vector<32x1xf32>
    %25 = arith.maximumf %23, %24 : vector<32x1xf32>
    %cst_12 = arith.constant 9.99999974E-6 : f32
    %26 = vector.broadcast %cst_12 : f32 to vector<32x1xf32>
    %27 = arith.addf %25, %26 : vector<32x1xf32>
    %28 = math.rsqrt %27 : vector<32x1xf32>
    %c0_13 = arith.constant 0 : index
    %c0_14 = arith.constant 0 : index
    %29 = vector.load %arg2[%c0_13, %c0_14] : memref<16x8xf32, #tpu.memory_space<vmem>>, vector<16x8xf32>
    %30 = vector.extract_strided_slice %29 {offsets = [0, 0], sizes = [8, 8], strides = [1, 1]} : vector<16x8xf32> to vector<8x8xf32>
    %cst_15 = arith.constant dense<0.000000e+00> : vector<32x8xf32>
    %31 = tpu.matmul %2, %30, %cst_15 {dimension_numbers = #tpu.dot_dimension_numbers<[1], [0], [0], [1], [0, 0, 1, 1], [], []>, precision = #tpu.contract_precision<fp32>} : vector<32x8xf32>, vector<8x8xf32>, vector<32x8xf32> -> vector<32x8xf32>
    %32 = vector.extract_strided_slice %29 {offsets = [8, 0], sizes = [8, 8], strides = [1, 1]} : vector<16x8xf32> to vector<8x8xf32>
    %cst_16 = arith.constant dense<0.000000e+00> : vector<32x8xf32>
    %33 = tpu.matmul %5, %32, %cst_16 {dimension_numbers = #tpu.dot_dimension_numbers<[1], [0], [0], [1], [0, 0, 1, 1], [], []>, precision = #tpu.contract_precision<fp32>} : vector<32x8xf32>, vector<8x8xf32>, vector<32x8xf32> -> vector<32x8xf32>
    %34 = arith.addf %31, %33 : vector<32x8xf32>
    %c0_17 = arith.constant 0 : index
    %c0_18 = arith.constant 0 : index
    %35 = vector.load %arg3[%c0_17, %c0_18] : memref<2x8xf32, #tpu.memory_space<vmem>>, vector<1x8xf32>
    %c1_19 = arith.constant 1 : index
    %c0_20 = arith.constant 0 : index
    %36 = vector.load %arg3[%c1_19, %c0_20] : memref<2x8xf32, #tpu.memory_space<vmem>>, vector<1x8xf32>
    %37 = vector.broadcast %28 : vector<32x1xf32> to vector<32x8xf32>
    %38 = arith.mulf %37, %34 : vector<32x8xf32>
    %39 = arith.mulf %28, %19 : vector<32x1xf32>
    %40 = vector.broadcast %39 : vector<32x1xf32> to vector<32x8xf32>
    %41 = vector.broadcast %35 : vector<1x8xf32> to vector<32x8xf32>
    %42 = arith.mulf %40, %41 : vector<32x8xf32>
    %43 = arith.subf %38, %42 : vector<32x8xf32>
    %44 = vector.broadcast %36 : vector<1x8xf32> to vector<32x8xf32>
    %45 = arith.addf %43, %44 : vector<32x8xf32>
    %c0_21 = arith.constant 0 : index
    %c0_22 = arith.constant 0 : index
    %46 = vector.load %arg4[%c0_21, %c0_22] : memref<32x8xf32, #tpu.memory_space<vmem>>, vector<32x8xf32>
    tpu.vector_store %arg4[%c0_21, %c0_22], %45 {strides = array<i32>} : memref<32x8xf32, #tpu.memory_space<vmem>>, vector<32x8xf32>,
    return
  }
  func.func @transform_0(%arg0: i32) -> (i32, i32, i32, i32) {
    %c0_i32 = arith.constant 0 : i32
    %c0_i32_0 = arith.constant 0 : i32
    %c0_i32_1 = arith.constant 0 : i32
    %c0_i32_2 = arith.constant 0 : i32
    return %arg0, %c0_i32, %c0_i32_0, %c0_i32_1 : i32, i32, i32, i32
  }
  func.func @transform_1(%arg0: i32) -> (i32, i32) {
    %c0_i32 = arith.constant 0 : i32
    %c0_i32_0 = arith.constant 0 : i32
    %c0_i32_1 = arith.constant 0 : i32
    return %c0_i32, %c0_i32_0 : i32, i32
  }
  func.func @transform_2(%arg0: i32) -> (i32, i32) {
    %c0_i32 = arith.constant 0 : i32
    %c0_i32_0 = arith.constant 0 : i32
    %c0_i32_1 = arith.constant 0 : i32
    return %c0_i32, %c0_i32_0 : i32, i32
  }
  func.func @transform_3(%arg0: i32) -> (i32, i32) {
    %c0_i32 = arith.constant 0 : i32
    %c0_i32_0 = arith.constant 0 : i32
    return %arg0, %c0_i32 : i32, i32
  }
}

</mosaic_0001>

<bundles_post_ra>
// kernel: tpu_custom_call.1
= control target key start
LH: loop header
LB: loop body
LE: loop exit
PB: predicated region body
PF: predicated region fallthrough
CT: control target
= control target key end

     0   :  { %s1808_s12 = smov 0   ;;  %s2077_s0 = inlined_call_operand.vmem [shape: f32[16,2,8,8], index: 0, kind: input, shape index: {}]   ;;  %s2078_s1 = inlined_call_operand.vmem [shape: f32[16,8], index: 1, kind: input, shape index: {}]   ;;  %s2079_s2 = inlined_call_operand.vmem [shape: f32[2,8], index: 2, kind: input, shape index: {}]   ;;  %s2080_s3 = inlined_call_operand.vmem [shape: f32[128,8], index: 3, kind: output, shape index: {}]  }
   0x1 LB: > { %s1545_s13 = sadd.s32 4294967295, %s1786_s12   ;;  %p1549_p0 = scmp.ge.s32.totalorder %s1786_s12, 1  ;;  %s1786_s12 = sphi %s1808_s12, %s13_s12  }
   0x2   : > { %p139_p1 = scmp.lt.s32.totalorder %s1786_s12, 5 }
   0x4   : > { %p140_p2 = pnand %p1549_p0, %p139_p1 }
   0x5   : > { %v280_v0 = vld [vmem:[%s2078_s1 + $0x8] sm:$0xff] (!%p140_p2)  ;;  %v279_v1 = vld [vmem:[%s2078_s1] sm:$0xff] (!%p140_p2)  ;;  %s1550_s18 = sshll.u32 (!%p140_p2), %s1545_s13, 2  ;;  %vm186_vm0 = vcmask (!%p140_p2), 64512  }
   0x6   : > { %143 = sbr.rel (%p140_p2) target bundleno = 296 (0x128), region = 32  ;;  %v1822_v2 = vand.u32 (!%p140_p2), 4294901760, %v280_v0  ;;  %v1824_v3 = vand.u32 (!%p140_p2), 4294901760, %v279_v1  ;;  %p165_p3 = scmp.lt.s32.totalorder (!%p140_p2), %s1550_s18, 15 }
   0x8   : > { %1624 = vmatprep.subr.mxu1 (!%p140_p2), %v1822_v2  ;;  %1672 = vmatprep.subr.mxu0 (!%p140_p2), %v1824_v3  ;;  %v1831_v4 = vsub.f32 (!%p140_p2), %v280_v0, %v1822_v2  ;;  %v1834_v5 = vsub.f32 (!%p140_p2), %v279_v1, %v1824_v3 }
   0x9   : > { %1625 = vmatpush3.msra.mxu1 (!%p140_p2), %v1822_v2  ;;  %1673 = vmatpush3.msra.mxu0 (!%p140_p2), %v1824_v3 }
   0xa   : > { %v1840_v6 = vand.u32 (!%p140_p2), 4294901760, %v1831_v4  ;;  %v1843_v7 = vand.u32 (!%p140_p2), 4294901760, %v1834_v5 }
   0xc   : > { %v403_v9 = vsub.f32 (!%p140_p2), %v1831_v4, %v1840_v6  ;;  %v990_v11 = vsub.f32 (!%p140_p2), %v1834_v5, %v1843_v7 }
   0xd   : > { %s2082_s18 = smov (!%p165_p3, %s1550_s18), 15 }
   0xe   : > { %s1563_s19 = sshll.u32 %s2082_s18, 4  ;;  %v404_v20 = vand.u32 4294901760, %v403_v9  ;;  %v991_v22 = vand.u32 4294901760, %v990_v11  ;;  %s1554_s25 = sshll.u32 %s2082_s18, 3 }
   0xf   : > { %s169_s22 = scalar_lea.vmem %s2077_s0, %s1563_s19  ;;  %s175_s30 = scalar_lea.vmem %s2080_s3, %s1554_s25 }
  0x10   : > { %v1848_v8 = vld [vmem:[%s169_s22 + $0x8] sm:$0xff]  ;;  %v1852_v10 = vld [vmem:[%s169_s22] sm:$0xff]  ;;  %v1856_v12 = vld [vmem:[%s169_s22 + $0x18] sm:$0xff]  ;;  %1632 = vmatprep.subr.mxu1 %v404_v20  ;;  %1680 = vmatprep.subr.mxu0 %v991_v22 }
  0x11   : > { %v282_v13 = vsel %vm186_vm0, %v1848_v8, 0  ;;  %v869_v14 = vsel %vm186_vm0, %v1852_v10, 0  ;;  %v285_v15 = vsel %vm186_vm0, %v1856_v12, 0  ;;  %v1864_v16 = vld [vmem:[%s169_s22 + $0x10] sm:$0xff]  ;;  %v1866_v17 = vld [vmem:[%s169_s22 + $0x28] sm:$0xff]  ;;  %v1868_v18 = vld [vmem:[%s169_s22 + $0x20] sm:$0xff] }
  0x12   : > { %v1870_v19 = vand.u32 4294901760, %v282_v13  ;;  %v1872_v21 = vand.u32 4294901760, %v869_v14  ;;  %v1874_v23 = vld [vmem:[%s169_s22 + $0x38] sm:$0xff]  ;;  %v1876_v24 = vld [vmem:[%s169_s22 + $0x30] sm:$0xff]  ;;  %v1878_v25 = vand.u32 4294901760, %v285_v15  ;;  %v872_v26 = vsel %vm186_vm0, %v1864_v16, 0 }
  0x13   : > { %v288_v27 = vsel %vm186_vm0, %v1866_v17, 0  ;;  %v875_v28 = vsel %vm186_vm0, %v1868_v18, 0  ;;  %v1892_v31 = vand.u32 4294901760, %v872_v26  ;;  %v291_v35 = vsel %vm186_vm0, %v1874_v23, 0 }
  0x14   : > { %v1887_v29 = vsub.f32 %v282_v13, %v1870_v19  ;;  %v1890_v30 = vsub.f32 %v869_v14, %v1872_v21  ;;  %v1894_v32 = vand.u32 4294901760, %v288_v27  ;;  %v1897_v33 = vsub.f32 %v285_v15, %v1878_v25 }
  0x15   : > { %v1899_v34 = vand.u32 4294901760, %v875_v28  ;;  %v878_v36 = vsel %vm186_vm0, %v1876_v24, 0  ;;  %v1908_v39 = vsub.f32 %v872_v26, %v1892_v31  ;;  %v1917_v43 = vand.u32 4294901760, %v291_v35 }
  0x16   : > { %v361_v37 = vand.u32 4294901760, %v1887_v29  ;;  %v948_v38 = vand.u32 4294901760, %v1890_v30  ;;  %v1911_v40 = vsub.f32 %v288_v27, %v1894_v32  ;;  %v371_v41 = vand.u32 4294901760, %v1897_v33 }
  0x17   : > { %v1915_v42 = vsub.f32 %v875_v28, %v1899_v34  ;;  %v1919_v44 = vand.u32 4294901760, %v878_v36  ;;  %v958_v47 = vand.u32 4294901760, %v1908_v39  ;;  %v1934_v51 = vsub.f32 %v291_v35, %v1917_v43 }
  0x18   : > { %v362_v45 = vsub.f32 %v1887_v29, %v361_v37  ;;  %v949_v46 = vsub.f32 %v1890_v30, %v948_v38  ;;  %v381_v48 = vand.u32 4294901760, %v1911_v40  ;;  %v372_v49 = vsub.f32 %v1897_v33, %v371_v41 }
  0x19   : > { %v968_v50 = vand.u32 4294901760, %v1915_v42  ;;  %v1937_v52 = vsub.f32 %v878_v36, %v1919_v44  ;;  %v959_v55 = vsub.f32 %v1908_v39, %v958_v47  ;;  %v391_v59 = vand.u32 4294901760, %v1934_v51 }
  0x1a   : > { %v363_v53 = vand.u32 4294901760, %v362_v45  ;;  %v950_v54 = vand.u32 4294901760, %v949_v46  ;;  %v382_v56 = vsub.f32 %v1911_v40, %v381_v48  ;;  %v373_v57 = vand.u32 4294901760, %v372_v49 }
  0x1b   : > { %v969_v58 = vsub.f32 %v1915_v42, %v968_v50  ;;  %v978_v60 = vand.u32 4294901760, %v1937_v52  ;;  %v960_v61 = vand.u32 4294901760, %v959_v55  ;;  %v187_v63 = vsel %vm186_vm0, %v1852_v10, 0.0 }
  0x1c   : > { %1626 = vmatprep.mubr.f32.mxu1 %v363_v53  ;;  %1674 = vmatprep.mubr.f32.mxu0 %v950_v54  ;;  %v383_v62 = vand.u32 4294901760, %v382_v56  ;;  %v392_v1 = vsub.f32 %v1934_v51, %v391_v59  ;;  %v193_v14 = vsel %vm186_vm0, %v1868_v18, 0.0  ;;  %v190_v15 = vsel %vm186_vm0, %v1864_v16, 0.0 }
  0x1d   : > { %1627 = vmatmul.mubr.f32.vlgmr.msra.gmra.mrb[0].mxu1 %v373_v57  ;;  %v970_v0 = vand.u32 4294901760, %v969_v58  ;;  %v979_v9 = vsub.f32 %v1937_v52, %v978_v60  ;;  %188 = vadd.xlane.f32.xlu0 %v187_v63  ;;  %v215_v26 = vmul.f32 %v1852_v10, %v1852_v10  ;;  %v208_v27 = vsel %vm186_vm0, %v1874_v23, 0.0 }
  0x1e   : > { %1633 = vmatpush3.msra.mxu1 %v404_v20  ;;  %1675 = vmatmul.mubr.f32.vlgmr.msra.gmra.mrb[0].mxu0 %v960_v61  ;;  %v393_v11 = vand.u32 4294901760, %v392_v1  ;;  %v196_v20 = vsel %vm186_vm0, %v1876_v24, 0.0  ;;  %v217_v10 = vmul.f32 %v1868_v18, %v1868_v18  ;;  %v231_v18 = vmul.f32 %v1848_v8, %v1848_v8 }
  0x1f   : > { %1681 = vmatpush3.msra.mxu0 %v991_v22  ;;  %1629 = vmatprep.mubr.f32.mxu1 %v383_v62  ;;  %v980_v13 = vand.u32 4294901760, %v979_v9  ;;  %v205_v22 = vsel %vm186_vm0, %v1866_v17, 0.0 }
  0x20   : > { %1677 = vmatprep.mubr.f32.mxu0 %v970_v0  ;;  %1640 = vmatprep.subr.mxu1 %v1831_v4 }
  0x21   : > { %1630 = vmatmul.mubr.f32.gmra.mrb[2].mxu1 %v393_v11  ;;  %1688 = vmatprep.subr.mxu0 %v1834_v5 }
  0x22   : > { %1678 = vmatmul.mubr.f32.gmra.mrb[2].mxu0 %v980_v13  ;;  %1634 = vmatprep.mubr.f32.mxu1 %v1870_v19 }
  0x23   : > { %1682 = vmatprep.mubr.f32.mxu0 %v1872_v21  ;;  %194 = vadd.xlane.f32.xlu1 %v193_v14 }
  0x24   : > { %191 = vadd.xlane.f32.xlu0 %v190_v15 }
  0x25   : > { %1635 = vmatmul.mubr.f32.vlgmr.msra.gmra.mrb[0].mxu1 %v1878_v25 }
  0x26   : > { %1641 = vmatpush3.msra.mxu1 %v1831_v4  ;;  %1683 = vmatmul.mubr.f32.vlgmr.msra.gmra.mrb[0].mxu0 %v1892_v31  ;;  %v199_v4 = vsel %vm186_vm0, %v1848_v8, 0.0  ;;  %v235_v8 = vsel %vm186_vm0, %v231_v18, 0.0 }
  0x27   : > { %1689 = vmatpush3.msra.mxu0 %v1834_v5  ;;  %1637 = vmatprep.mubr.f32.mxu1 %v1894_v32  ;;  %v202_v5 = vsel %vm186_vm0, %v1856_v12, 0.0 }
  0x28   : > { %1685 = vmatprep.mubr.f32.mxu0 %v1899_v34  ;;  %1648 = vmatprep.subr.mxu1 %v1822_v2 }
  0x29   : > { %1638 = vmatmul.mubr.f32.gmra.mrb[2].mxu1 %v1917_v43  ;;  %1696 = vmatprep.subr.mxu0 %v1824_v3 }
  0x2a   : > { %1686 = vmatmul.mubr.f32.gmra.mrb[2].mxu0 %v1919_v44  ;;  %1642 = vmatprep.mubr.f32.mxu1 %v1887_v29  ;;  %v218_v29 = vmul.f32 %v1876_v24, %v1876_v24 }
  0x2b   : > { %1690 = vmatprep.mubr.f32.mxu0 %v1890_v30  ;;  %197 = vadd.xlane.f32.xlu1 %v196_v20 }
  0x2c   : > { %200 = vadd.xlane.f32.xlu0 %v199_v4  ;;  %v228_v24 = vsel %vm186_vm0, %v218_v29, 0.0 }
  0x2d   : > { %1643 = vmatmul.mubr.f32.vlgmr.msra.gmra.mrb[0].mxu1 %v1897_v33 }
  0x2e   : > { %1649 = vmatpush3.msra.mxu1 %v1822_v2  ;;  %1691 = vmatmul.mubr.f32.vlgmr.msra.gmra.mrb[0].mxu0 %v1908_v39 }
  0x2f   : > { %1697 = vmatpush3.msra.mxu0 %v1824_v3  ;;  %1645 = vmatprep.mubr.f32.mxu1 %v1911_v40 }
  0x30   : > { %1693 = vmatprep.mubr.f32.mxu0 %v1915_v42  ;;  %1656 = vmatprep.subr.mxu1 %v1840_v6 }
  0x31   : > { %1646 = vmatmul.mubr.f32.gmra.mrb[2].mxu1 %v1934_v51  ;;  %1704 = vmatprep.subr.mxu0 %v1843_v7 }
  0x32   : > { %1694 = vmatmul.mubr.f32.gmra.mrb[2].mxu0 %v1937_v52  ;;  %1650 = vmatprep.mubr.f32.mxu1 %v361_v37 }
  0x33   : > { %1698 = vmatprep.mubr.f32.mxu0 %v948_v38  ;;  %203 = vadd.xlane.f32.xlu1 %v202_v5 }
  0x34   : > { %206 = vadd.xlane.f32.xlu0 %v205_v22 }
  0x35   : > { %1651 = vmatmul.mubr.f32.vlgmr.msra.gmra.mrb[0].mxu1 %v371_v41 }
  0x36   : > { %1657 = vmatpush3.msra.mxu1 %v1840_v6  ;;  %1699 = vmatmul.mubr.f32.vlgmr.msra.gmra.mrb[0].mxu0 %v958_v47  ;;  %v219_v6 = vsel %vm186_vm0, %v215_v26, 0.0 }
  0x37   : > { %1705 = vmatpush3.msra.mxu0 %v1843_v7  ;;  %1653 = vmatprep.mubr.f32.mxu1 %v381_v48  ;;  %v216_v7 = vmul.f32 %v1864_v16, %v1864_v16  ;;  %v225_v16 = vsel %vm186_vm0, %v217_v10, 0.0 }
  0x38   : > { %1701 = vmatprep.mubr.f32.mxu0 %v968_v50  ;;  %1664 = vmatprep.subr.mxu1 %v1822_v2 }
  0x39   : > { %1654 = vmatmul.mubr.f32.gmra.mrb[2].mxu1 %v391_v59  ;;  %1712 = vmatprep.subr.mxu0 %v1824_v3  ;;  %v222_v28 = vsel %vm186_vm0, %v216_v7, 0.0 }
  0x3a   : > { %1702 = vmatmul.mubr.f32.gmra.mrb[2].mxu0 %v978_v60  ;;  %1658 = vmatprep.mubr.f32.mxu1 %v1870_v19 }
  0x3b   : > { %1706 = vmatprep.mubr.f32.mxu0 %v1872_v21  ;;  %209 = vadd.xlane.f32.xlu1 %v208_v27 }
  0x3c   : > { %220 = vadd.xlane.f32.xlu0 %v219_v6 }
  0x3d   : > { %1659 = vmatmul.mubr.f32.vlgmr.msra.gmra.mrb[0].mxu1 %v1878_v25 }
  0x3e   : > { %1665 = vmatpush3.msra.mxu1 %v1822_v2  ;;  %1707 = vmatmul.mubr.f32.vlgmr.msra.gmra.mrb[0].mxu0 %v1892_v31  ;;  %v232_v2 = vmul.f32 %v1856_v12, %v1856_v12  ;;  %v234_v12 = vmul.f32 %v1874_v23, %v1874_v23 }
  0x3f   : > { %1713 = vmatpush3.msra.mxu0 %v1824_v3  ;;  %1661 = vmatprep.mubr.f32.mxu1 %v1894_v32  ;;  %v233_v3 = vmul.f32 %v1866_v17, %v1866_v17 }
  0x40   : > { %1709 = vmatprep.mubr.f32.mxu0 %v1899_v34  ;;  %223 = vadd.xlane.f32.xlu1 %v222_v28  ;;  %v238_v30 = vsel %vm186_vm0, %v232_v2, 0.0  ;;  %v244_v17 = vsel %vm186_vm0, %v234_v12, 0.0 }
  0x41   : > { %1662 = vmatmul.mubr.f32.gmra.mrb[2].mxu1 %v1917_v43  ;;  %226 = vadd.xlane.f32.xlu0 %v225_v16 }
  0x42   : > { %1710 = vmatmul.mubr.f32.gmra.mrb[2].mxu0 %v1919_v44  ;;  %1666 = vmatprep.mubr.f32.mxu1 %v1870_v19  ;;  %v241_v19 = vsel %vm186_vm0, %v233_v3, 0.0 }
  0x43   : > { %1714 = vmatprep.mubr.f32.mxu0 %v1872_v21 }
  0x44   : > { %229 = vadd.xlane.f32.xlu1 %v228_v24 }
  0x45   : > { %1667 = vmatmul.mubr.f32.vlgmr.msra.gmra.mrb[0].mxu1 %v1878_v25  ;;  %236 = vadd.xlane.f32.xlu0 %v235_v8  ;;  %v1559_v8 = vld [vmem:[%s2079_s2] ss:$0 sm:$0xff] }
  0x46   : > { %1715 = vmatmul.mubr.f32.vlgmr.msra.gmra.mrb[0].mxu0 %v1892_v31  ;;  %1669 = vmatprep.mubr.f32.mxu1 %v1894_v32 }
  0x47   : > { %1717 = vmatprep.mubr.f32.mxu0 %v1899_v34 }
  0x48   : > { %239 = vadd.xlane.f32.xlu1 %v238_v30 }
  0x49   : > { %1670 = vmatmul.mubr.f32.gmra.mrb[2].mxu1 %v1917_v43  ;;  %242 = vadd.xlane.f32.xlu0 %v241_v19 }
  0x4a   : > { %1718 = vmatmul.mubr.f32.gmra.mrb[2].mxu0 %v1919_v44 }
  0x4c   : > { %245 = vadd.xlane.f32.xlu1 %v244_v17 }
  0xaa   : > { %v189_v25 = vpop.xlane.xlu0 %188 }
  0xb0   : > { %v195_v21 = vpop.xlane.xlu1 %194 }
  0xb1   : > { %v192_v33 = vpop.xlane.xlu0 %191 }
  0xb8   : > { %v198_v23 = vpop.xlane.xlu1 %197 }
  0xb9   : > { %v201_v35 = vpop.xlane.xlu0 %200 }
  0xba   : > { %v211_v43 = vadd.f32 %v201_v35, %v189_v25  ;;  %v1560_v25 = vld [vmem:[%s2079_s2 + $0x1] ss:$0 sm:$0xff] }
  0xbc   : > { %v251_v47 = vmul.f32 0.0625, %v211_v43 }
  0xbe   : > { %v259_v56 = vmul.f32 %v251_v47, %v251_v47 }
  0xc0   : > { %v204_v31 = vpop.xlane.xlu1 %203 }
  0xc1   : > { %v207_v36 = vpop.xlane.xlu0 %206  ;;  %v212_v41 = vadd.f32 %v204_v31, %v192_v33 }
  0xc2   : > { %v213_v48 = vadd.f32 %v207_v36, %v195_v21 }
  0xc3   : > { %v252_v45 = vmul.f32 0.0625, %v212_v41 }
  0xc4   : > { %v253_v57 = vmul.f32 0.0625, %v213_v48 }
  0xc5   : > { %v260_v52 = vmul.f32 %v252_v45, %v252_v45 }
  0xc6   : > { %v261_v63 = vmul.f32 %v253_v57, %v253_v57 }
  0xc8   : > { %v210_v32 = vpop.xlane.xlu1 %209 }
  0xc9   : > { %v221_v38 = vpop.xlane.xlu0 %220  ;;  %v214_v46 = vadd.f32 %v210_v32, %v198_v23 }
  0xcb   : > { %v254_v53 = vmul.f32 0.0625, %v214_v46 }
  0xcd   : > { %v224_v37 = vpop.xlane.xlu1 %223  ;;  %v262_v60 = vmul.f32 %v254_v53, %v254_v53 }
  0xce   : > { %v227_v39 = vpop.xlane.xlu0 %226 }
  0xd1   : > { %v230_v34 = vpop.xlane.xlu1 %229 }
  0xd2   : > { %v237_v42 = vpop.xlane.xlu0 %236 }
  0xd3   : > { %v247_v49 = vadd.f32 %v237_v42, %v221_v38 }
  0xd5   : > { %v240_v40 = vpop.xlane.xlu1 %239  ;;  %v255_v58 = vmul.f32 0.0625, %v247_v49 }
  0xd6   : > { %v248_v44 = vadd.f32 %v240_v40, %v224_v37  ;;  %v243_v51 = vpop.xlane.xlu0 %242 }
  0xd7   : > { %v249_v59 = vadd.f32 %v243_v51, %v227_v39  ;;  %v263_v0 = vsub.f32 %v255_v58, %v259_v56 }
  0xd8   : > { %v256_v54 = vmul.f32 0.0625, %v248_v44 }
  0xd9   : > { %v246_v50 = vpop.xlane.xlu1 %245  ;;  %v257_v1 = vmul.f32 0.0625, %v249_v59  ;;  %v267_v13 = vmax.f32 %v263_v0, 0.0 }
  0xda   : > { %v250_v55 = vadd.f32 %v246_v50, %v230_v34  ;;  %v264_v61 = vsub.f32 %v256_v54, %v260_v52 }
  0xdb   : > { %v265_v14 = vsub.f32 %v257_v1, %v261_v63  ;;  %v271_v4 = vadd.f32 1e-05, %v267_v13 }
  0xdc   : > { %v258_v62 = vmul.f32 0.0625, %v250_v55  ;;  %v268_v9 = vmax.f32 %v264_v61, 0.0 }
  0xdd   : > { %v269_v5 = vmax.f32 %v265_v14, 0.0 }
  0xde   : > { %v266_v11 = vsub.f32 %v258_v62, %v262_v60  ;;  %v272_v15 = vadd.f32 1e-05, %v268_v9 }
  0xdf   : > { %v273_v26 = vadd.f32 1e-05, %v269_v5 }
  0xe0   : > { %v270_v20 = vmax.f32 %v266_v11, 0.0  ;;  %1772 = vrsqrt.f32 %v272_v15 }
  0xe1   : > { %1774 = vrsqrt.f32 %v271_v4 }
  0xe2   : > { %v274_v22 = vadd.f32 1e-05, %v270_v20 }
  0xe4   : > { %1776 = vrsqrt.f32 %v274_v22 }
  0xe5   : > { %1778 = vrsqrt.f32 %v273_v26 }
  0xea   : > { %v1773_v27 = vpop.eup %1772 }
  0xeb   : > { %v1775_v6 = vpop.eup %1774  ;;  %v1462_v10 = vmul.f32 %v1773_v27, %v252_v45 }
  0xec   : > { %v1461_v18 = vmul.f32 %v1775_v6, %v251_v47 }
  0xed   : > { %v1470_v19 = vmul.f32 %v1559_v8, %v1462_v10 }
  0xee   : > { %v1777_v28 = vpop.eup %1776  ;;  %v1469_v33 = vmul.f32 %v1559_v8, %v1461_v18 }
  0xef   : > { %v1779_v24 = vpop.eup %1778  ;;  %v1464_v21 = vmul.f32 %v1777_v28, %v254_v53 }
  0xf0   : > { %v1463_v32 = vmul.f32 %v1779_v24, %v253_v57 }
  0xf1   : > { %v1472_v42 = vmul.f32 %v1559_v8, %v1464_v21 }
  0xf2   : > { %v1471_v46 = vmul.f32 %v1559_v8, %v1463_v32 }
 0x118   : > { %v1668_v7 = vpop.f32.mrb[0].mxu1 }
 0x119   : > { %v1716_v29 = vpop.f32.mrb[0].mxu0  ;;  %v846_v16 = vpop.f32.mrb[1].mxu1 }
 0x11a   : > { %v1720_v2 = vadd.f32 %v1716_v29, %v1668_v7  ;;  %v1433_v3 = vpop.f32.mrb[1].mxu0 }
 0x11b   : > { %v1721_v30 = vadd.f32 %v1433_v3, %v846_v16 }
 0x11c   : > { %v1458_v12 = vmul.f32 %v1773_v27, %v1720_v2  ;;  %v1671_v17 = vpop.f32.mrb[2].mxu1 }
 0x11d   : > { %v1457_v23 = vmul.f32 %v1775_v6, %v1721_v30  ;;  %v1719_v31 = vpop.f32.mrb[2].mxu0  ;;  %v858_v35 = vpop.f32.mrb[3].mxu1 }
 0x11e   : > { %v1474_v36 = vsub.f32 %v1458_v12, %v1470_v19  ;;  %v1722_v37 = vadd.f32 %v1719_v31, %v1671_v17  ;;  %v1445_v38 = vpop.f32.mrb[3].mxu0 }
 0x11f   : > { %v1473_v34 = vsub.f32 %v1457_v23, %v1469_v33  ;;  %v1723_v39 = vadd.f32 %v1445_v38, %v858_v35 }
 0x120   : > { %v1482_v40 = vadd.f32 %v1560_v25, %v1474_v36  ;;  %v1460_v41 = vmul.f32 %v1777_v28, %v1722_v37 }
 0x121   : > { %v1481_v43 = vadd.f32 %v1560_v25, %v1473_v34  ;;  %v1459_v45 = vmul.f32 %v1779_v24, %v1723_v39 }
 0x122   : > { %1486 = vst.msk [vmem:[%s175_s30 + $0x8] sm:$0xff] %vm186_vm0, %v1482_v40  ;;  %v1476_v44 = vsub.f32 %v1460_v41, %v1472_v42 }
 0x123   : > { %1485 = vst.msk [vmem:[%s175_s30] sm:$0xff] %vm186_vm0, %v1481_v43  ;;  %v1475_v47 = vsub.f32 %v1459_v45, %v1471_v46 }
 0x124   : > { %v1484_v48 = vadd.f32 %v1560_v25, %v1476_v44 }
 0x125   : > { %v1483_v49 = vadd.f32 %v1560_v25, %v1475_v47 }
 0x126   : > { %1488 = vst.msk [vmem:[%s175_s30 + $0x18] sm:$0xff] %vm186_vm0, %v1484_v48 }
 0x127   : > { %1487 = vst.msk [vmem:[%s175_s30 + $0x10] sm:$0xff] %vm186_vm0, %v1483_v49 }
 0x128 PF: > { %s13_s12 = sadd.s32 1, %s1786_s12  }
 0x129   : > { %p10_p4 = scmp.ge.s32.totalorder %s13_s12, 6  }
 0x12b   :  { %12 = sbr.rel (!%p10_p4) target bundleno = 1 (0x1), region = 63 }

</bundles_post_ra>
